<compile_context>
chip_gen: v6e
topology: v6e:2x2x1
jax: 0.10.0
libtpu: 0.0.40
codegen_flags: <defaults>
</compile_context>

<pallas_src>
import math

import jax
import jax.numpy as jnp
from jax.experimental import pallas as pl
from jax.experimental.pallas import tpu as pltpu


# ----------------------------------------------------------------------------
# Pallas kernels
# ----------------------------------------------------------------------------
def _choose_tm(batch):
    """Sublane-aligned (multiple-of-8) batch tile; prefer >=2 grid steps so the
    leading 'parallel' grid axis can shard across the 2 TensorCores on v7x."""
    if batch % 8 != 0:
        return batch  # full-array block satisfies the "equals full dim" rule
    for tm in (256, 128, 64, 32, 16, 8):
        if batch % tm == 0 and batch // tm >= 2:
            return tm
    return batch


def _make_fused_mlp_kernel(relu_flags):
    """Kernel computing a chain of Linear layers, with an optional fused ReLU
    epilogue per layer.  All intermediates live in vregs/VMEM only."""
    n_layers = len(relu_flags)

    def kernel(x_ref, *args):
        *wb_refs, o_ref = args
        h = x_ref[...]
        for i in range(n_layers):
            w = wb_refs[2 * i][...]
            b = wb_refs[2 * i + 1][...]
            h = jnp.dot(h, w, preferred_element_type=jnp.float32) + b
            if relu_flags[i]:
                h = jnp.maximum(h, 0.0)  # free VPU epilogue under MXU/DMA slack
        o_ref[...] = h.astype(o_ref.dtype)

    return kernel


def pallas_mlp(x, layers, relu_flags):
    """relu-optional Linear chain in a single pallas_call.

    layers: list of (W, b) with W: (Cin_i, Cout_i), b: (1, Cout_i)
    relu_flags: tuple of bools, whether layer i is followed by ReLU.
    Only x and the final (B, Cout) output are DMA'd to/from HBM.
    """
    B, Cin = x.shape
    assert layers and len(layers) == len(relu_flags)
    tm = _choose_tm(B)

    in_specs = [pl.BlockSpec((tm, Cin), lambda i: (i, 0))]
    args = [x]
    for (w, b) in layers:
        cin, cout = w.shape
        # Weights / bias are replicated across batch tiles (constant index_map)
        # so they are DMA'd once and stay VMEM-resident.
        in_specs.append(pl.BlockSpec((cin, cout), lambda i: (0, 0)))
        in_specs.append(pl.BlockSpec((1, cout), lambda i: (0, 0)))
        args.append(w)
        args.append(b)
    Cout = layers[-1][0].shape[1]

    # TODO(synk): for non-toy layer sizes, add K/N tiling with a
    # pltpu.VMEM((tm, tn), f32) accumulator + pl.when(k==0)/k==last pattern and
    # bf16 inputs; the toy layers here fit VMEM whole, so a single K block is
    # both correct and fastest.
    return pl.pallas_call(
        _make_fused_mlp_kernel(tuple(relu_flags)),
        out_shape=jax.ShapeDtypeStruct((B, Cout), x.dtype),
        grid=(B // tm,),
        in_specs=in_specs,
        out_specs=pl.BlockSpec((tm, Cout), lambda i: (i, 0)),
        compiler_params=pltpu.CompilerParams(
            dimension_semantics=("parallel",)),
    )(*args)


def _relu_kernel(x_ref, o_ref):
    o_ref[...] = jnp.maximum(x_ref[...], 0.0)


def pallas_relu(x):
    """Standalone ReLU kernel (only used when a ReLU child is NOT preceded by a
    Linear child; otherwise it is fused into the linear kernel)."""
    B, C = x.shape
    tm = _choose_tm(B)
    return pl.pallas_call(
        _relu_kernel,
        out_shape=jax.ShapeDtypeStruct((B, C), x.dtype),
        grid=(B // tm,),
        in_specs=[pl.BlockSpec((tm, C), lambda i: (i, 0))],
        out_specs=pl.BlockSpec((tm, C), lambda i: (i, 0)),
        compiler_params=pltpu.CompilerParams(
            dimension_semantics=("parallel",)),
    )(x)


# ----------------------------------------------------------------------------
# Module system mirroring the PyTorch ModuleWrapper semantics
# ----------------------------------------------------------------------------
class ModuleWrapper:
    """Wrapper with support for arbitrary flags and a universal forward pass.

    forward(x) feeds x sequentially through all registered children; with no
    children it is the identity (exactly as the PyTorch original).  Consecutive
    Linear[/ReLU] children are fused into a single Pallas kernel launch.
    """

    def __init__(self):
        self._children = []

    def add_child(self, module):
        self._children.append(module)
        return module

    def children(self):
        return list(self._children)

    def set_flag(self, flag_name, value):
        setattr(self, flag_name, value)
        for m in self.children():
            if hasattr(m, "set_flag"):
                m.set_flag(flag_name, value)

    def forward(self, x):
        children = self.children()
        n = len(children)
        i = 0
        while i < n:
            m = children[i]
            if isinstance(m, PallasLinear):
                # Fuse a maximal run of Linear [+ ReLU] children into one kernel.
                layers, relu_flags = [], []
                while i < n and isinstance(children[i], PallasLinear):
                    layers.append((children[i].weight, children[i].bias))
                    if i + 1 < n and isinstance(children[i + 1], PallasReLU):
                        relu_flags.append(True)
                        i += 2
                    else:
                        relu_flags.append(False)
                        i += 1
                x = pallas_mlp(x, layers, tuple(relu_flags))
            else:
                x = m(x)
                i += 1
        return x

    def __call__(self, x):
        return self.forward(x)


class PallasLinear(ModuleWrapper):
    """nn.Linear-equivalent child; standalone forward is a single fused kernel."""

    def __init__(self, in_features, out_features, key):
        super().__init__()
        kw, kb = jax.random.split(key)
        bound = 1.0 / math.sqrt(in_features)
        # PyTorch-style uniform(-1/sqrt(fan_in), +1/sqrt(fan_in)) init.
        self.weight = jax.random.uniform(
            kw, (in_features, out_features), jnp.float32, -bound, bound
        )
        # Stored as (1, Cout) once, so no per-call reshape is needed.
        self.bias = jax.random.uniform(
            kb, (1, out_features), jnp.float32, -bound, bound
        )

    def forward(self, x):
        return pallas_mlp(x, [(self.weight, self.bias)], (False,))


class PallasReLU(ModuleWrapper):
    def forward(self, x):
        return pallas_relu(x)


# ----------------------------------------------------------------------------
# Demo / smoke test
# ----------------------------------------------------------------------------
if __name__ == "__main__":
    key = jax.random.PRNGKey(0)
    k_x, k_l1, k_l2 = jax.random.split(key, 3)

    # batch=16 -> batch tile tm=8, grid=(2,) "parallel" (megacore-friendly).
    batch, hidden_in, hidden_mid, hidden_out = 16, 32, 64, 16
    x = jax.random.normal(k_x, (batch, hidden_in), jnp.float32)

    # Case 1: bare ModuleWrapper (no children) -> identity forward.
    empty = ModuleWrapper()
    y_empty = empty(x)
    assert jnp.array_equal(jax.block_until_ready(y_empty), x)

    # Case 2: ModuleWrapper with children -> sequential forward through
    # Linear / ReLU / Linear, fused into ONE pallas_call and wrapped in jit.
    net = ModuleWrapper()
    net.add_child(PallasLinear(hidden_in, hidden_mid, k_l1))
    net.add_child(PallasReLU())
    net.add_child(PallasLinear(hidden_mid, hidden_out, k_l2))
    net.set_flag("deterministic", True)  # exercise the flag-propagation API

    fwd = jax.jit(net.forward)
    y = jax.block_until_ready(fwd(x))
    assert y.shape == (batch, hidden_out)

    # Pure-JAX reference check of the same sequential forward.
    l1, _, l2 = net.children()
    ref = jnp.maximum(x @ l1.weight + l1.bias, 0.0) @ l2.weight + l2.bias
    assert jnp.allclose(y, ref, atol=1e-4, rtol=1e-5), float(
        jnp.max(jnp.abs(y - ref))
    )

    # Also check the unfused single-child paths still work.
    y_lin = jax.block_until_ready(l1(x))
    assert jnp.allclose(y_lin, x @ l1.weight + l1.bias, atol=1e-4, rtol=1e-5)
    y_relu = jax.block_until_ready(PallasReLU()(y_lin))
    assert jnp.allclose(y_relu, jnp.maximum(y_lin, 0.0))

    print("KERNEL_OK")
</pallas_src>

<mosaic_0001>
module attributes {stable_mosaic.version = 11 : i64} {
  func.func @kernel(%arg0: i32, %arg1: memref<8x32xf32, #tpu.memory_space<vmem>>, %arg2: memref<32x64xf32, #tpu.memory_space<vmem>>, %arg3: memref<1x64xf32, #tpu.memory_space<vmem>>, %arg4: memref<64x16xf32, #tpu.memory_space<vmem>>, %arg5: memref<1x16xf32, #tpu.memory_space<vmem>>, %arg6: memref<8x16xf32, #tpu.memory_space<vmem>>) attributes {dimension_semantics = [#tpu.dimension_semantics<parallel>], iteration_bounds = array<i64: 2>, scalar_prefetch = 0 : i64, scratch_operands = 0 : i64, tpu.core_type = #tpu.core_type<tc>, window_params = [{transform_indices = @transform_0, window_bounds = array<i64: 8, 32>}, {pipeline_mode = #tpu.pipeline_mode<synchronous>, transform_indices = @transform_1, window_bounds = array<i64: 32, 64>}, {pipeline_mode = #tpu.pipeline_mode<synchronous>, transform_indices = @transform_2, window_bounds = array<i64: 1, 64>}, {pipeline_mode = #tpu.pipeline_mode<synchronous>, transform_indices = @transform_3, window_bounds = array<i64: 64, 16>}, {pipeline_mode = #tpu.pipeline_mode<synchronous>, transform_indices = @transform_4, window_bounds = array<i64: 1, 16>}, {transform_indices = @transform_5, window_bounds = array<i64: 8, 16>}]} {
    %c0 = arith.constant 0 : index
    %c0_0 = arith.constant 0 : index
    %0 = vector.load %arg1[%c0, %c0_0] : memref<8x32xf32, #tpu.memory_space<vmem>>, vector<8x32xf32>
    %c0_1 = arith.constant 0 : index
    %c0_2 = arith.constant 0 : index
    %1 = vector.load %arg2[%c0_1, %c0_2] : memref<32x64xf32, #tpu.memory_space<vmem>>, vector<32x64xf32>
    %c0_3 = arith.constant 0 : index
    %c0_4 = arith.constant 0 : index
    %2 = vector.load %arg3[%c0_3, %c0_4] : memref<1x64xf32, #tpu.memory_space<vmem>>, vector<1x64xf32>
    %cst = arith.constant dense<0.000000e+00> : vector<8x64xf32>
    %3 = tpu.matmul %0, %1, %cst {dimension_numbers = #tpu.dot_dimension_numbers<[1], [0], [0], [1], [0, 0, 1, 1], [], []>} : vector<8x32xf32>, vector<32x64xf32>, vector<8x64xf32> -> vector<8x64xf32>
    %4 = vector.broadcast %2 : vector<1x64xf32> to vector<8x64xf32>
    %5 = arith.addf %3, %4 : vector<8x64xf32>
    %cst_5 = arith.constant 0.000000e+00 : f32
    %6 = vector.broadcast %cst_5 : f32 to vector<8x64xf32>
    %7 = arith.maximumf %5, %6 : vector<8x64xf32>
    %c0_6 = arith.constant 0 : index
    %c0_7 = arith.constant 0 : index
    %8 = vector.load %arg4[%c0_6, %c0_7] : memref<64x16xf32, #tpu.memory_space<vmem>>, vector<64x16xf32>
    %c0_8 = arith.constant 0 : index
    %c0_9 = arith.constant 0 : index
    %9 = vector.load %arg5[%c0_8, %c0_9] : memref<1x16xf32, #tpu.memory_space<vmem>>, vector<1x16xf32>
    %cst_10 = arith.constant dense<0.000000e+00> : vector<8x16xf32>
    %10 = tpu.matmul %7, %8, %cst_10 {dimension_numbers = #tpu.dot_dimension_numbers<[1], [0], [0], [1], [0, 0, 1, 1], [], []>} : vector<8x64xf32>, vector<64x16xf32>, vector<8x16xf32> -> vector<8x16xf32>
    %11 = vector.broadcast %9 : vector<1x16xf32> to vector<8x16xf32>
    %12 = arith.addf %10, %11 : vector<8x16xf32>
    %c0_11 = arith.constant 0 : index
    %c0_12 = arith.constant 0 : index
    %13 = vector.load %arg6[%c0_11, %c0_12] : memref<8x16xf32, #tpu.memory_space<vmem>>, vector<8x16xf32>
    tpu.vector_store %arg6[%c0_11, %c0_12], %12 {strides = array<i32>} : memref<8x16xf32, #tpu.memory_space<vmem>>, vector<8x16xf32>,
    return
  }
  func.func @transform_0(%arg0: i32) -> (i32, i32) {
    %c0_i32 = arith.constant 0 : i32
    %c0_i32_0 = arith.constant 0 : i32
    return %arg0, %c0_i32 : i32, i32
  }
  func.func @transform_1(%arg0: i32) -> (i32, i32) {
    %c0_i32 = arith.constant 0 : i32
    %c0_i32_0 = arith.constant 0 : i32
    %c0_i32_1 = arith.constant 0 : i32
    return %c0_i32, %c0_i32_0 : i32, i32
  }
  func.func @transform_2(%arg0: i32) -> (i32, i32) {
    %c0_i32 = arith.constant 0 : i32
    %c0_i32_0 = arith.constant 0 : i32
    %c0_i32_1 = arith.constant 0 : i32
    return %c0_i32, %c0_i32_0 : i32, i32
  }
  func.func @transform_3(%arg0: i32) -> (i32, i32) {
    %c0_i32 = arith.constant 0 : i32
    %c0_i32_0 = arith.constant 0 : i32
    %c0_i32_1 = arith.constant 0 : i32
    return %c0_i32, %c0_i32_0 : i32, i32
  }
  func.func @transform_4(%arg0: i32) -> (i32, i32) {
    %c0_i32 = arith.constant 0 : i32
    %c0_i32_0 = arith.constant 0 : i32
    %c0_i32_1 = arith.constant 0 : i32
    return %c0_i32, %c0_i32_0 : i32, i32
  }
  func.func @transform_5(%arg0: i32) -> (i32, i32) {
    %c0_i32 = arith.constant 0 : i32
    %c0_i32_0 = arith.constant 0 : i32
    return %arg0, %c0_i32 : i32, i32
  }
}

</mosaic_0001>

<bundles_post_ra>
// kernel: forward.1
= control target key start
LH: loop header
LB: loop body
LE: loop exit
PB: predicated region body
PF: predicated region fallthrough
CT: control target
= control target key end

     0   :  { %10 = vsyncpa [#allocation3], 0  ;;  %s1054_s0 = inlined_call_operand.hbm [shape: f32[16,32], index: 0, kind: input, shape index: {}]   ;;  %s1055_s1 = inlined_call_operand.hbm [shape: f32[32,64], index: 1, kind: input, shape index: {}]   ;;  %s1056_s2 = inlined_call_operand.vmem [shape: f32[1,64], index: 2, kind: input, shape index: {}]   ;;  %s1057_s3 = inlined_call_operand.hbm [shape: f32[64,16], index: 3, kind: input, shape index: {}]   ;;  %s1058_s4 = inlined_call_operand.vmem [shape: f32[1,16], index: 4, kind: input, shape index: {}]   ;;  %s1059_s5 = inlined_call_operand.hbm [shape: f32[16,16], index: 5, kind: output, shape index: {}]  }
   0x1   :  { %12 = vsyncpa [#allocation3 + $0x1], 0 }
   0x2   :  { %13 = vsyncpa [#allocation6], 0 }
   0x3   :  { %14 = vsyncpa [#allocation4], 0 }
   0x4   :  { %16 = vsyncpa [#allocation4 + $0x1], 0  ;;  %s873_s18 = smov 0   ;;  %s875_s19 = smov 0  }
   0x5   :  { %s877_s20 = smov 0   ;;  %s879_s21 = smov 0  }
   0x6 LB: > { %s894_s22 = sadd.s32 4294967295, %s833_s21   ;;  %s550_s23 = sadd.s32 4294967294, %s833_s21   ;;  %s833_s21 = sphi %s879_s21, %s1081_s21   ;;  %s829_s20 = sphi %s877_s20, %s1080_s20   ;;  %s825_s19 = sphi %s875_s19, %s1079_s19   ;;  %s821_s18 = sphi %s873_s18, %s1078_s18  }
   0x7   : > { %p42_p0 = scmp.ne.s32.totalorder %s825_s19, %s821_s18  ;;  %p1060_p1 = scmp.eq.s32.totalorder %s894_s22, 0 }
   0x8   : > { %p156_p3 = scmp.eq.s32.totalorder %s550_s23, 1  ;;  %p551_p5 = scmp.ge.s32.totalorder %s833_s21, 1 }
   0x9   : > { %p903_p4 = por %p1060_p1, %p42_p0  ;;  %p163_p7 = scmp.lt.s32.totalorder %s833_s21, 3 }
   0xa   : > { %p908_p6 = por %p156_p3, %p42_p0  ;;  %s835_s27 = smov [#allocation5]  }
   0xb   : > { %s1064_s24 = scalar_select %p903_p4, 1, 0 }
   0xc   : > { %s1065_s25 = scalar_select %p908_p6, 1, 0 }
   0xd   : > { %p913_p8 = pnand %p551_p5, %p163_p7  ;;  %s175_s28 = sshll.u32 %s835_s27, 4  ;;  %s176_s28 = int_to_ptr.vmem [resolvable:$true] %s175_s28 }
   0xe   : > { %s836_s30 = smov [#allocation7]   ;;  %s696_s7 = scalar_lea.vmem %s176_s28, 512 }
   0xf   : > { %s1066_s26 = scalar_select %p913_p8, 1, 0 }
  0x10   : > { %p626_p9 = pneg %p913_p8  ;;  %s191_s6 = sshll.u32 %s836_s30, 4  ;;  %s192_s6 = int_to_ptr.vmem [resolvable:$true] %s191_s6 }
  0x11   : > { %p697_p13 = scmp.ne.s32.totalorder %s176_s28, %s696_s7  ;;  %p704_p5 = scmp.lt.s32.totalorder %s176_s28, %s176_s28 }
  0x12   : > { %p922_p11 = pnand %p626_p9, %p1060_p1  ;;  %p705_p7 = scmp.lt.s32.totalorder %s696_s7, %s696_s7 }
  0x14   : > { %p687_p12 = pneg %p922_p11  ;;  %p706_p10 = por %p705_p7, %p704_p5 }
  0x16   : > { %p699_p0 = pnand %p697_p13, %p687_p12 }
  0x18   : > { %p700_p3 = pneg %p699_p0 }
  0x1a   : > { %p707_p9 = pnand %p706_p10, %p700_p3 }
  0x1c   : > { %710 = shalt.err (!%p707_p9)
}
  0x1d   : > { %s837_s8 = smov 128   ;;  %s838_s9 = smov 8  }
  0x1e   : > { %629 = dma.hbm_to_vmem [thread:$0]  (!%p922_p11), %s1055_s1, 512, %s176_s28, [#allocation6], %s837_s8, %s837_s8, %s838_s9  }
  0x1f   : > { %s722_s12 = scalar_lea.vmem %s192_s6, 1024  ;;  %p730_p2 = scmp.lt.s32.totalorder %s192_s6, %s192_s6 }
  0x20   : > { %p723_p1 = scmp.ne.s32.totalorder %s192_s6, %s722_s12  ;;  %p731_p6 = scmp.lt.s32.totalorder %s722_s12, %s722_s12 }
  0x22   : > { %p725_p13 = pnand %p723_p1, %p687_p12  ;;  %p732_p5 = por %p731_p6, %p730_p2 }
  0x24   : > { %p726_p0 = pneg %p725_p13 }
  0x26   : > { %p733_p10 = pnand %p732_p5, %p726_p0 }
  0x28   : > { %736 = shalt.err (!%p733_p10)
}
  0x29   : > { %632 = dma.hbm_to_vmem [thread:$0]  (!%p922_p11), %s1057_s3, 1024, %s192_s6, [#allocation6], %s837_s8, %s837_s8, %s838_s9  }
  0x2a   : > { %s945_s15 = sadd.s32 1, %s833_s21   ;;  %s29_s16 = sadd.s32 1, %s829_s20 }
  0x2b   : > { %s26_s17 = ssub.s32 %s833_s21, %s945_s15  ;;  %p36_p1 = scmp.ne.s32.totalorder %s829_s20, %s825_s19 }
  0x2c   : > { %p27_p2 = scmp.eq.s32.totalorder %s26_s17, 0  ;;  %p37_p6 = scmp.eq.s32.totalorder %s833_s21, 0 }
  0x2d   : > { %p1068_p12 = scmp.eq.s32.totalorder %s894_s22, 1  ;;  %p643_p7 = scmp.lt.s32.totalorder %s833_s21, 2 }
  0x2e   : > { %s961_s27 = scalar_select %p27_p2, %s829_s20, %s29_s16  }
  0x2f   : > { %p955_p3 = por %p1068_p12, %p36_p1  ;;  %p38_p9 = por %p37_p6, %p36_p1 }
  0x30   : > { %s208_s28 = sand.u32 1, %s829_s20   ;;  %s556_s30 = sshll.u32 %s833_s21, 7 }
  0x31   : > { %s1069_s23 = scalar_select %p955_p3, 1, 0 }
  0x32   : > { %s555_s29 = sshll.u32 %s208_s28, 3  ;;  %s968_s8 = scalar_lea.hbm %s1054_s0, %s556_s30 }
  0x33   : > { %s212_s9 = scalar_lea.vmem [#allocation2], %s555_s29  ;;  %p970_p11 = pnand %p643_p7, %p38_p9 }
  0x34   : > { %s219_s10 = sshll.u32 %s212_s9, 4  ;;  %s209_s12 = scalar_lea.sflag [#allocation3], %s208_s28  ;;  %s220_s10 = int_to_ptr.vmem [resolvable:$true] %s219_s10 }
  0x35   : > { %s737_s13 = scalar_lea.hbm %s968_s8, 128  ;;  %p739_p0 = pneg %p970_p11 }
  0x36   : > { %p738_p13 = scmp.ne.s32.totalorder %s968_s8, %s737_s13  ;;  %s742_s17 = scalar_lea.hbm %s1054_s0, 256 }
  0x37   : > { %p743_p1 = scmp.lt.s32.totalorder %s968_s8, %s1054_s0  ;;  %p744_p2 = scmp.lt.s32.totalorder %s742_s17, %s737_s13 }
  0x38   : > { %p740_p5 = pnand %p739_p0, %p738_p13 }
  0x39   : > { %p745_p6 = por %p744_p2, %p743_p1 }
  0x3a   : > { %p741_p10 = pneg %p740_p5 }
  0x3c   : > { %p746_p12 = pnand %p745_p6, %p741_p10 }
  0x3e   : > { %749 = shalt.err (!%p746_p12)
}
  0x3f   : > { %s750_s6 = scalar_lea.vmem %s220_s10, 128  ;;  %s839_s28 = smov [#allocation2]  }
  0x40   : > { %p751_p7 = scmp.ne.s32.totalorder %s220_s10, %s750_s6  ;;  %s755_s7 = sshll.u32 %s839_s28, 4  ;;  %s756_s7 = int_to_ptr.vmem [resolvable:$false] %s755_s7 }
  0x41   : > { %s757_s9 = scalar_lea.vmem %s756_s7, 256  ;;  %p758_p13 = scmp.lt.s32.totalorder %s220_s10, %s756_s7 }
  0x42   : > { %p753_p9 = pnand %p751_p7, %p739_p0  ;;  %p759_p5 = scmp.lt.s32.totalorder %s757_s9, %s750_s6 }
  0x44   : > { %p754_p3 = pneg %p753_p9  ;;  %p760_p4 = por %p759_p5, %p758_p13 }
  0x46   : > { %p761_p8 = pnand %p760_p4, %p754_p3 }
  0x48   : > { %764 = shalt.err (!%p761_p8)
}
  0x49   : > { %636 = dma.hbm_to_vmem [thread:$0]  (!%p970_p11), %s968_s8, 128, %s220_s10, %s209_s12  }
  0x4a   : > { %p1071_p10 = scmp.ne.s32.totalorder %s1066_s26, 0 }
  0x4b   : > { %s991_s13 = sand.u32 (!%p1071_p10), 1, %s825_s19   ;;  %p1072_p4 = scmp.ne.s32.totalorder (!%p1071_p10), %s1064_s24, 0 }
  0x4c   : > { %228 = sbr.rel (%p1071_p10) target bundleno = 500 (0x1f4), region = 40  ;;  %s558_s14 = sshll.u32 (!%p1071_p10), %s991_s13, 3 }
  0x4d   : > { %s231_s16 = scalar_lea.sflag (!%p1071_p10), [#allocation3], %s991_s13  ;;  %s234_s17 = scalar_lea.vmem (!%p1071_p10), [#allocation2], %s558_s14 }
  0x51   : > { %808 = dma.done.wait (%p1072_p4), %s231_s16, 128  }
  0x52   : > { %810 = vsyncadd (%p1072_p4), %s231_s16, 4294967168  ;;  %p1073_p8 = scmp.eq.s32.totalorder %s894_s22, 0 }
  0x54   : > { %812 = dma.done.wait (%p1073_p8), [#allocation6], 1536   ;;  %p1074_p3 = pmov %p1073_p8 }
  0x55   : > { %v840_v0 = vmov 0.0   ;;  %vm841_vm0 = vmmov 0   ;;  %v273_v1 = vld [vmem:[#allocation5 + $0x18] sm:$0xff]  ;;  %v272_v2 = vld [vmem:[#allocation5 + $0x10] sm:$0xff]  ;;  %v271_v4 = vld [vmem:[#allocation5 + $0x8] sm:$0xff]  ;;  %vm281_vm1 = vcmask 261120  }
  0x56   : > { %814 = vsyncadd (%p1074_p3), [#allocation6], 4294965760  ;;  %584 = vmatprep.subr.mxu0 %v840_v0  ;;  %592 = vmatprep.mubr.msk.f32.mxu0 %vm841_vm0, %v840_v0  ;;  %v363_v3 = vld [vmem:[#allocation7 + $0x38] sm:$0xff]  ;;  %v362_v5 = vld [vmem:[#allocation7 + $0x30] sm:$0xff]  ;;  %vm371_vm2 = vcmask 523264   ;;  %s567_s11 = sshll.u32 %s894_s22, 7 }
  0x57   : > { %595 = vmatprep.subr.mxu1 %v840_v0  ;;  %611 = vmatprep.mubr.msk.f32.mxu1 %vm841_vm0, %v840_v0  ;;  %v361_v6 = vld [vmem:[#allocation7 + $0x28] sm:$0xff]  ;;  %v270_v7 = vld [vmem:[#allocation5] sm:$0xff]  ;;  %v269_v8 = vld [vmem:[%s234_s17] sm:$0xff]  ;;  %s268_s12 = scalar_lea.vmem [#allocation8], %s558_s14  ;;  %vm445_vm3 = vcmask 130048   ;;  %s1017_s28 = scalar_lea.hbm %s1059_s5, %s567_s11 }
  0x58   : > { %585 = vmatpush3.msra.mxu0 %v273_v1  ;;  %596 = vmatpush3.msra.mxu1 %v363_v3  ;;  %v360_v9 = vld [vmem:[#allocation7 + $0x20] sm:$0xff]  ;;  %v359_v10 = vld [vmem:[#allocation7 + $0x18] sm:$0xff]  ;;  %v358_v11 = vld [vmem:[#allocation7 + $0x10] sm:$0xff]  ;;  %s461_s30 = sshll.u32 %s268_s12, 4  ;;  %s448_s7 = scalar_lea.sflag [#allocation4], %s991_s13  ;;  %s462_s30 = int_to_ptr.vmem [resolvable:$true] %s461_s30 }
  0x59   : > { %586 = vmatprep.subr.mxu0 %v840_v0  ;;  %597 = vmatprep.subr.mxu1 %v840_v0  ;;  %v357_v12 = vld [vmem:[#allocation7 + $0x8] sm:$0xff]  ;;  %v356_v13 = vld [vmem:[#allocation7] sm:$0xff]  ;;  %v562_v14 = vld [vmem:[%s1056_s2] ss:$0 sm:$0xff]  ;;  %s765_s9 = scalar_lea.vmem %s462_s30, 128  ;;  %p1075_p0 = scmp.ne.s32.totalorder %s1069_s23, 0 }
  0x5a   : > { %587 = vmatpush3.msra.mxu0 %v272_v2  ;;  %598 = vmatpush3.msra.mxu1 %v362_v5  ;;  %v564_v19 = vld [vmem:[%s1058_s4] ss:$0 sm:$0xff]  ;;  %p766_p11 = scmp.ne.s32.totalorder %s462_s30, %s765_s9  ;;  %s842_s22 = smov [#allocation8]  }
  0x5b   : > { %588 = vmatprep.subr.mxu0 %v840_v0  ;;  %599 = vmatprep.subr.mxu1 %v840_v0  ;;  %s769_s14 = sshll.u32 %s842_s22, 4  ;;  %s770_s14 = int_to_ptr.vmem [resolvable:$false] %s769_s14 }
  0x5c   : > { %589 = vmatpush3.msra.mxu0 %v271_v4  ;;  %600 = vmatpush3.msra.mxu1 %v361_v6  ;;  %p767_p1 = pnand %p766_p11, %p1075_p0  ;;  %s771_s16 = scalar_lea.vmem %s770_s14, 256 }
  0x5d   : > { %590 = vmatprep.subr.mxu0 %v840_v0  ;;  %601 = vmatprep.subr.mxu1 %v840_v0  ;;  %p772_p6 = scmp.lt.s32.totalorder %s462_s30, %s770_s14  ;;  %p773_p12 = scmp.lt.s32.totalorder %s771_s16, %s765_s9 }
  0x5e   : > { %591 = vmatpush3.msra.mxu0 %v270_v7  ;;  %602 = vmatpush3.msra.mxu1 %v360_v9  ;;  %p768_p2 = pneg %p767_p1 }
  0x5f   : > { %593 = vmatmul.mubr.msk.f32.vlgmr.msra.gmra.mxu0 %vm281_vm1, %v269_v8  ;;  %603 = vmatprep.subr.mxu1 %v840_v0  ;;  %p774_p7 = por %p773_p12, %p772_p6 }
  0x60   : > { %604 = vmatpush3.msra.mxu1 %v359_v10 }
  0x61   : > { %605 = vmatprep.subr.mxu1 %v840_v0  ;;  %p775_p9 = pnand %p774_p7, %p768_p2 }
  0x62   : > { %606 = vmatpush3.msra.mxu1 %v358_v11 }
  0x63   : > { %607 = vmatprep.subr.mxu1 %v840_v0 }
  0x64   : > { %608 = vmatpush3.msra.mxu1 %v357_v12 }
  0x65   : > { %609 = vmatprep.subr.mxu1 %v840_v0 }
  0x66   : > { %610 = vmatpush3.msra.mxu1 %v356_v13 }
 0x11f   : > { %v351_v15 = vpop.f32.mrf.mxu0 }
 0x120   : > { %v352_v16 = vadd.f32 %v562_v14, %v351_v15 }
 0x121   : > { %v594_v17 = vpop.f32.mrf.mxu0 }
 0x122   : > { %v355_v18 = vmax.f32 %v352_v16, 0.0 }
 0x124   : > { %612 = vmatmul.mubr.msk.f32.vlgmr.msra.gmra.mxu1 %vm371_vm2, %v355_v18 }
 0x1e4   : > { %v441_v20 = vpop.f32.mrf.mxu1 }
 0x1e5   : > { %v442_v21 = vadd.f32 %v564_v19, %v441_v20 }
 0x1e6   : > { %v613_v22 = vpop.f32.mrf.mxu1 }
 0x1e7   : > { %446 = vst.msk [vmem:[%s268_s12] sm:$0xff] %vm445_vm3, %v442_v21 }
 0x1e8   : > { %778 = shalt.err (!%p775_p9)
}
 0x1e9   : > { %s779_s17 = scalar_lea.hbm %s1017_s28, 128  ;;  %s783_s26 = scalar_lea.hbm %s1059_s5, 256 }
 0x1ea   : > { %p780_p13 = scmp.ne.s32.totalorder %s1017_s28, %s779_s17  ;;  %p784_p4 = scmp.lt.s32.totalorder %s1017_s28, %s1059_s5 }
 0x1eb   : > { %p785_p8 = scmp.lt.s32.totalorder %s783_s26, %s779_s17 }
 0x1ec   : > { %p781_p5 = pnand %p780_p13, %p1075_p0 }
 0x1ed   : > { %p786_p3 = por %p785_p8, %p784_p4 }
 0x1ee   : > { %p782_p10 = pneg %p781_p5 }
 0x1f0   : > { %p787_p11 = pnand %p786_p3, %p782_p10 }
 0x1f2   : > { %790 = shalt.err (!%p787_p11)
}
 0x1f3   : > { %624 = dma.vmem_to_hbm [thread:$0]  (%p1075_p0), %s462_s30, 128, %s1017_s28, %s448_s7  }
 0x1f4 PF: > { %s473_s11 = sand.u32 1, %s821_s18   ;;  %p1076_p1 = scmp.ne.s32.totalorder %s1065_s25, 0 }
 0x1f5   : > { %p1077_p2 = scmp.ge.s32.totalorder %s833_s21, 2  ;;  %s474_s12 = scalar_lea.sflag [#allocation4], %s473_s11 }
 0x1f7   : > { %p638_p6 = pnand %p1077_p2, %p1076_p1 }
 0x1f9   : > { %p639_p12 = pneg %p638_p6 }
 0x1fb   : > { %816 = dma.done.wait (%p639_p12), %s474_s12, 128  }
 0x1fc   : > { %818 = vsyncadd (%p639_p12), %s474_s12, 4294967168  ;;  %p19_p7 = scmp.ge.s32.totalorder %s945_s15, 4   ;;  %s1078_s18 = smov %s825_s19 }
 0x1fd   : > { %s1079_s19 = smov %s829_s20  ;;  %s1080_s20 = smov %s961_s27 }
 0x1fe   : > { %s1081_s21 = smov %s945_s15  ;;  %21 = sbr.rel (!%p19_p7) target bundleno = 6 (0x6), region = 93 }
 0x203   :  { %479 = vsyncpa [#allocation3], 1 }
 0x204   :  { %481 = vsyncpa [#allocation3 + $0x1], 1 }
 0x205   :  { %482 = vsyncpa [#allocation6], 1 }
 0x206   :  { %483 = vsyncpa [#allocation4], 1 }
 0x207   :  { %485 = vsyncpa [#allocation4 + $0x1], 1 }

</bundles_post_ra>
